<compile_context>
chip_gen: v7x
topology: tpu7x:2x2x1
jax: 0.10.0
libtpu: 0.0.40
codegen_flags: <defaults>
</compile_context>

<pallas_src>
import functools

import jax
import jax.numpy as jnp
from jax.experimental import pallas as pl
from jax.experimental.pallas import tpu as pltpu

LANE = 128            # lane width: packed output width is a multiple of this
SUBLANE = 8           # sublane granularity for batch-group tiles
X_BLOCK_BYTES = 2 * 1024 * 1024   # target per-buffer x-block size in VMEM


def _round_up(x: int, m: int) -> int:
    return ((x + m - 1) // m) * m


def _packed_linear_kernel(x_ref, w_ref, b_ref, o_ref):
    # x_ref: (tm, Kp) f32   -- Kp = pack * input_dim (P batch rows per row)
    # w_ref: (Kp, Wout) f32 -- VMEM-resident block-diagonal weight
    # b_ref: (1, Wout) f32  -- VMEM-resident tiled bias
    # o_ref: (tm, Wout) f32 -- lane-dense output (P batch rows per row)
    o_ref[...] = (
        jnp.dot(x_ref[...], w_ref[...], preferred_element_type=jnp.float32)
        + b_ref[...]
    )


def prepare_linear_params(weight, bias):
    """One-time parameter prep (model-build time, not per call).

    Args:
      weight: (num_classes, input_dim) f32  (PyTorch nn.Linear layout)
      bias:   (num_classes,) f32
    Returns dict with:
      w_packed: (pack*input_dim, Wout) f32 block-diagonal weight
      b_packed: (1, Wout) f32 tiled bias
      w_t:      (input_dim, num_classes) f32 (plain weight.T, for the tail path)
      b:        (num_classes,) f32
      pack, num_classes: ints (static)
    """
    num_classes, input_dim = weight.shape
    w_t = weight.T.astype(jnp.float32)            # (D, C)
    b = bias.astype(jnp.float32)                  # (C,)

    # Pack P batch rows per 128-lane output row (P=16 for num_classes=8).
    pack = max(1, LANE // num_classes) if num_classes <= LANE else 1
    packed_cols = pack * num_classes
    wout = _round_up(packed_cols, LANE)

    # Block-diagonal weight: w_packed[r*D + d, r*C + c] = weight[c, d].
    w_packed = jnp.kron(jnp.eye(pack, dtype=jnp.float32), w_t)   # (P*D, P*C)
    if wout != packed_cols:
        w_packed = jnp.pad(w_packed, ((0, 0), (0, wout - packed_cols)))

    b_packed = jnp.tile(b, pack)                                  # (P*C,)
    if wout != packed_cols:
        b_packed = jnp.pad(b_packed, (0, wout - packed_cols))
    b_packed = b_packed.reshape(1, wout)

    return dict(w_packed=w_packed, b_packed=b_packed, w_t=w_t, b=b,
                pack=pack, num_classes=num_classes)


@functools.partial(jax.jit, static_argnames=("pack", "num_classes"))
def stellar_classification_head(x, w_packed, b_packed, w_t, b, *,
                                pack, num_classes):
    """Forward pass: out = x @ weight.T + bias, f32 in / f32 out.

    Args:
      x: (batch, input_dim) f32
      w_packed/b_packed/w_t/b: from prepare_linear_params
      pack, num_classes: static ints from prepare_linear_params
    Returns:
      (batch, num_classes) f32
    """
    batch, input_dim = x.shape
    kp, wout = w_packed.shape
    assert kp == pack * input_dim

    g = batch // pack            # number of full pack-groups
    b_main = g * pack
    pieces = []

    if g > 0:
        # Free row-major reshape (bitcast when batch % pack == 0; otherwise a
        # cheap leading-dim slice first).
        x_main = x if b_main == batch else x[:b_main]
        x_packed = x_main.reshape(g, kp)

        # Batch-group tile: big enough to amortize the ~0.35us grid-step
        # overhead; guarantee >= 2 grid steps (v7x megacore) when g is large.
        tm_cap = max(SUBLANE, _round_up(X_BLOCK_BYTES // (kp * 4), SUBLANE))
        if g >= 2 * SUBLANE:
            tm = min(tm_cap, _round_up((g + 1) // 2, SUBLANE))
        else:
            tm = g   # single small block: block dims equal full array dims -> legal
        grid = (pl.cdiv(g, tm),)   # ragged last block handled by Pallas; no padding

        cost = pl.CostEstimate(
            flops=2 * g * kp * wout,
            transcendentals=0,
            bytes_accessed=(4 * g * kp          # x stream (f32)
                            + 4 * kp * wout     # W (f32, VMEM-resident, read once)
                            + 4 * wout          # bias
                            + 4 * g * wout),    # out (f32, lane-dense, no class pad)
        )

        out_packed = pl.pallas_call(
            _packed_linear_kernel,
            out_shape=jax.ShapeDtypeStruct((g, wout), jnp.float32),
            grid_spec=pltpu.PrefetchScalarGridSpec(
                num_scalar_prefetch=0,
                grid=grid,
                in_specs=[
                    pl.BlockSpec((tm, kp), lambda i: (i, 0)),     # x: streams with grid
                    pl.BlockSpec((kp, wout), lambda i: (0, 0)),   # W: resident
                    pl.BlockSpec((1, wout), lambda i: (0, 0)),    # bias: resident
                ],
                out_specs=pl.BlockSpec((tm, wout), lambda i: (i, 0)),
            ),
            compiler_params=pltpu.CompilerParams(
                dimension_semantics=("parallel",),   # megacore sharding on v7x
            ),
            cost_estimate=cost,
        )(x_packed, w_packed, b_packed)

        packed_cols = pack * num_classes
        if packed_cols != wout:
            # Only happens when num_classes does not pack 128 lanes exactly.
            out_packed = out_packed[:, :packed_cols]
        pieces.append(out_packed.reshape(b_main, num_classes))

    if b_main < batch:
        # Ragged tail (< pack rows) and tiny batches: plain XLA is strictly
        # faster than a pallas_call launch here.
        pieces.append(x[b_main:] @ w_t + b)

    return pieces[0] if len(pieces) == 1 else jnp.concatenate(pieces, axis=0)


if __name__ == "__main__":
    # Small shapes consistent with the module: input_dim=32, num_classes=8.
    # batch=40 = 2 full pack-groups (Pallas kernel path) + a ragged tail of 8
    # rows (plain-XLA path), so both branches are exercised.
    batch, input_dim, num_classes = 40, 32, 8

    key = jax.random.PRNGKey(0)
    kx, kw, kb = jax.random.split(key, 3)

    x = jax.random.normal(kx, (batch, input_dim), dtype=jnp.float32)
    # Deterministic parameter init (Kaiming-uniform-ish scale, like nn.Linear).
    bound = 1.0 / jnp.sqrt(jnp.float32(input_dim))
    weight = jax.random.uniform(
        kw, (num_classes, input_dim), minval=-bound, maxval=bound,
        dtype=jnp.float32)
    bias = jax.random.uniform(
        kb, (num_classes,), minval=-bound, maxval=bound, dtype=jnp.float32)

    params = prepare_linear_params(weight, bias)
    out = stellar_classification_head(
        x, params["w_packed"], params["b_packed"], params["w_t"], params["b"],
        pack=params["pack"], num_classes=params["num_classes"])
    out = jax.block_until_ready(out)
    assert out.shape == (batch, num_classes)

    # Reference: full-f32 nn.Linear semantics.
    ref = x @ weight.T + bias
    assert jnp.allclose(out, ref, atol=1e-4, rtol=1e-4), float(
        jnp.max(jnp.abs(out - ref)))

    print("KERNEL_OK")
</pallas_src>

<mosaic_0001>
module attributes {stable_mosaic.version = 11 : i64} {
  func.func @_packed_linear_kernel(%arg0: i32, %arg1: memref<2x512xf32, #tpu.memory_space<vmem>>, %arg2: memref<512x128xf32, #tpu.memory_space<vmem>>, %arg3: memref<1x128xf32, #tpu.memory_space<vmem>>, %arg4: memref<2x128xf32, #tpu.memory_space<vmem>>) attributes {dimension_semantics = [#tpu.dimension_semantics<parallel>], iteration_bounds = array<i64: 1>, scalar_prefetch = 0 : i64, scratch_operands = 0 : i64, tpu.core_type = #tpu.core_type<tc>, window_params = [{transform_indices = @transform_0, window_bounds = array<i64: 2, 512>}, {pipeline_mode = #tpu.pipeline_mode<synchronous>, transform_indices = @transform_1, window_bounds = array<i64: 512, 128>}, {pipeline_mode = #tpu.pipeline_mode<synchronous>, transform_indices = @transform_2, window_bounds = array<i64: 1, 128>}, {transform_indices = @transform_3, window_bounds = array<i64: 2, 128>}]} {
    %c0 = arith.constant 0 : index
    %c0_0 = arith.constant 0 : index
    %0 = vector.load %arg1[%c0, %c0_0] : memref<2x512xf32, #tpu.memory_space<vmem>>, vector<2x512xf32>
    %c0_1 = arith.constant 0 : index
    %c0_2 = arith.constant 0 : index
    %1 = vector.load %arg2[%c0_1, %c0_2] : memref<512x128xf32, #tpu.memory_space<vmem>>, vector<512x128xf32>
    %cst = arith.constant dense<0.000000e+00> : vector<2x128xf32>
    %2 = tpu.matmul %0, %1, %cst {dimension_numbers = #tpu.dot_dimension_numbers<[1], [0], [0], [1], [0, 0, 1, 1], [], []>} : vector<2x512xf32>, vector<512x128xf32>, vector<2x128xf32> -> vector<2x128xf32>
    %c0_3 = arith.constant 0 : index
    %c0_4 = arith.constant 0 : index
    %3 = vector.load %arg3[%c0_3, %c0_4] : memref<1x128xf32, #tpu.memory_space<vmem>>, vector<1x128xf32>
    %4 = vector.broadcast %3 : vector<1x128xf32> to vector<2x128xf32>
    %5 = arith.addf %2, %4 : vector<2x128xf32>
    %c0_5 = arith.constant 0 : index
    %c0_6 = arith.constant 0 : index
    %6 = vector.load %arg4[%c0_5, %c0_6] : memref<2x128xf32, #tpu.memory_space<vmem>>, vector<2x128xf32>
    tpu.vector_store %arg4[%c0_5, %c0_6], %5 {strides = array<i32>} : memref<2x128xf32, #tpu.memory_space<vmem>>, vector<2x128xf32>,
    return
  }
  func.func @transform_0(%arg0: i32) -> (i32, i32) {
    %c0_i32 = arith.constant 0 : i32
    %c0_i32_0 = arith.constant 0 : i32
    return %arg0, %c0_i32 : i32, i32
  }
  func.func @transform_1(%arg0: i32) -> (i32, i32) {
    %c0_i32 = arith.constant 0 : i32
    %c0_i32_0 = arith.constant 0 : i32
    %c0_i32_1 = arith.constant 0 : i32
    return %c0_i32, %c0_i32_0 : i32, i32
  }
  func.func @transform_2(%arg0: i32) -> (i32, i32) {
    %c0_i32 = arith.constant 0 : i32
    %c0_i32_0 = arith.constant 0 : i32
    %c0_i32_1 = arith.constant 0 : i32
    return %c0_i32, %c0_i32_0 : i32, i32
  }
  func.func @transform_3(%arg0: i32) -> (i32, i32) {
    %c0_i32 = arith.constant 0 : i32
    %c0_i32_0 = arith.constant 0 : i32
    return %arg0, %c0_i32 : i32, i32
  }
}

</mosaic_0001>

<bundles_post_ra>
// kernel: stellar_classification_head.1
= control target key start
LH: loop header
LB: loop body
LE: loop exit
PB: predicated region body
PF: predicated region fallthrough
CT: control target
= control target key end

     0   :  { %8 = vsyncpa [#allocation3], 0  ;;  %s432_s12 = smov [#allocation2]   ;;  %s477_s0 = inlined_call_operand.vmem [shape: f32[2,512], index: 0, kind: input, shape index: {}]   ;;  %s478_s1 = inlined_call_operand.hbm [shape: f32[512,128], index: 1, kind: input, shape index: {}]   ;;  %s479_s2 = inlined_call_operand.vmem [shape: f32[1,128], index: 2, kind: input, shape index: {}]   ;;  %s480_s3 = inlined_call_operand.vmem [shape: f32[2,128], index: 3, kind: output, shape index: {}]  }
   0x1   :  { %s16_s13 = sshll.u32 %s432_s12, 4  ;;  %s408_s16 = scalar_lea.hbm %s478_s1, 8192  ;;  %s17_s13 = int_to_ptr.vmem [resolvable:$true] %s16_s13 }
   0x2   :  { %p409_p0 = scmp.ne.s32.totalorder %s478_s1, %s408_s16  ;;  %p412_p1 = scmp.lt.u32.totalorder %s408_s16, %s478_s1 }
   0x4   :  { %p414_p2 = pnand %p412_p1, %p409_p0 }
   0x6   :  { %417 = shalt.err (!%p414_p2)
}
   0x7   :  { %s418_s21 = scalar_lea.vmem %s17_s13, 8192  ;;  %p423_p4 = scmp.lt.s32.totalorder %s17_s13, %s17_s13 }
   0x8   :  { %p419_p3 = scmp.ne.s32.totalorder %s17_s13, %s418_s21  ;;  %p424_p5 = scmp.lt.s32.totalorder %s418_s21, %s418_s21 }
   0xa   :  { %p425_p6 = por %p424_p5, %p423_p4 }
   0xc   :  { %p426_p7 = pnand %p425_p6, %p419_p3 }
   0xe   :  { %429 = shalt.err (!%p426_p7)
}
   0xf   :  { %s433_s22 = smov 128   ;;  %s434_s23 = smov 8  }
  0x10   :  { %22 = dma.hbm_to_vmem [thread:$0]  %s478_s1, 8192, %s17_s13, [#allocation3], %s433_s22, %s433_s22, %s434_s23  }
  0x11   :  { %430 = dma.done.wait [#allocation3], 8192  }
  0x12   :  { %431 = vsyncadd [#allocation3], 4294959104  ;;  %v45_v0 = vld [vmem:[#allocation2 + $0x80] sm:$0xff]  ;;  %v46_v1 = vld [vmem:[#allocation2 + $0x88] sm:$0xff]  ;;  %v435_v47 = vmov 1983009808   ;;  %v105_v49 = vlaneseq }
  0x13   :  { %v29_v2 = vld [vmem:[#allocation2] sm:$0xff]  ;;  %v339_v3 = vpack.c.bf16 %v46_v1, %v45_v0  ;;  %v30_v4 = vld [vmem:[#allocation2 + $0x8] sm:$0xff]  ;;  %v47_v11 = vld [vmem:[#allocation2 + $0x90] sm:$0xff]  ;;  %v103_v48 = vunpack.c.l.s4 %v435_v47 }
  0x14   :  { %v77_v5 = vld [vmem:[#allocation2 + $0x180] sm:$0xff]  ;;  %v78_v6 = vld [vmem:[#allocation2 + $0x188] sm:$0xff]  ;;  %v341_v7 = vpack.c.bf16 %v30_v4, %v29_v2  ;;  %v48_v13 = vld [vmem:[#allocation2 + $0x98] sm:$0xff]  ;;  %v106_v0 = vshrl.u32 %v105_v49, 7 }
  0x15   :  { %v371_v8 = vpack.c.bf16 %v78_v6, %v77_v5  ;;  %v61_v9 = vld [vmem:[#allocation2 + $0x100] sm:$0xff]  ;;  %v62_v10 = vld [vmem:[#allocation2 + $0x108] sm:$0xff]  ;;  %340 = vmatprep.subr.bf16.mxu0 %v339_v3  ;;  %v31_v14 = vld [vmem:[#allocation2 + $0x10] sm:$0xff]  ;;  %v343_v16 = vpack.c.bf16 %v48_v13, %v47_v11  ;;  %v104_v63 = vunpack.c.0.s8 %v103_v48 }
  0x16   :  { %v373_v12 = vpack.c.bf16 %v62_v10, %v61_v9  ;;  %v32_v15 = vld [vmem:[#allocation2 + $0x18] sm:$0xff]  ;;  %342 = vmatpush3.bf16.msra.mxu0 %v341_v7  ;;  %v79_v18 = vld [vmem:[#allocation2 + $0x190] sm:$0xff]  ;;  %v49_v23 = vld [vmem:[#allocation2 + $0xa0] sm:$0xff] }
  0x17   :  { %372 = vmatprep.subr.bf16.mxu1 %v371_v8  ;;  %v345_v17 = vpack.c.bf16 %v32_v15, %v31_v14  ;;  %v80_v19 = vld [vmem:[#allocation2 + $0x198] sm:$0xff]  ;;  %v63_v20 = vld [vmem:[#allocation2 + $0x110] sm:$0xff]  ;;  %v50_v24 = vld [vmem:[#allocation2 + $0xa8] sm:$0xff]  ;;  %344 = vmatprep.subr.bf16.mxu0 %v343_v16  ;;  %v107_v13 = vsub.s32 %v104_v63, %v106_v0 }
  0x18   :  { %374 = vmatpush3.bf16.msra.mxu1 %v373_v12  ;;  %v375_v21 = vpack.c.bf16 %v80_v19, %v79_v18  ;;  %v64_v22 = vld [vmem:[#allocation2 + $0x118] sm:$0xff]  ;;  %v347_v26 = vpack.c.bf16 %v50_v24, %v49_v23  ;;  %v33_v27 = vld [vmem:[#allocation2 + $0x20] sm:$0xff]  ;;  %v34_v28 = vld [vmem:[#allocation2 + $0x28] sm:$0xff] }
  0x19   :  { %v377_v25 = vpack.c.bf16 %v64_v22, %v63_v20  ;;  %v81_v29 = vld [vmem:[#allocation2 + $0x1a0] sm:$0xff]  ;;  %v82_v30 = vld [vmem:[#allocation2 + $0x1a8] sm:$0xff]  ;;  %v349_v33 = vpack.c.bf16 %v34_v28, %v33_v27  ;;  %v51_v35 = vld [vmem:[#allocation2 + $0xb0] sm:$0xff] }
  0x1a   :  { %376 = vmatprep.subr.bf16.mxu1 %v375_v21  ;;  %v65_v31 = vld [vmem:[#allocation2 + $0x120] sm:$0xff]  ;;  %v66_v32 = vld [vmem:[#allocation2 + $0x128] sm:$0xff]  ;;  %346 = vmatpush3.bf16.msra.mxu0 %v345_v17  ;;  %v379_v34 = vpack.c.bf16 %v82_v30, %v81_v29  ;;  %v52_v36 = vld [vmem:[#allocation2 + $0xb8] sm:$0xff] }
  0x1b   :  { %v35_v37 = vld [vmem:[#allocation2 + $0x30] sm:$0xff]  ;;  %348 = vmatprep.subr.bf16.mxu0 %v347_v26  ;;  %v381_v38 = vpack.c.bf16 %v66_v32, %v65_v31  ;;  %v351_v39 = vpack.c.bf16 %v52_v36, %v51_v35  ;;  %v36_v40 = vld [vmem:[#allocation2 + $0x38] sm:$0xff]  ;;  %v53_v46 = vld [vmem:[#allocation2 + $0xc0] sm:$0xff] }
  0x1c   :  { %378 = vmatpush3.bf16.msra.mxu1 %v377_v25  ;;  %v83_v41 = vld [vmem:[#allocation2 + $0x1b0] sm:$0xff]  ;;  %v84_v42 = vld [vmem:[#allocation2 + $0x1b8] sm:$0xff]  ;;  %v54_v50 = vld [vmem:[#allocation2 + $0xc8] sm:$0xff]  ;;  %v353_v51 = vpack.c.bf16 %v36_v40, %v35_v37 }
  0x1d   :  { %380 = vmatprep.subr.bf16.mxu1 %v379_v34  ;;  %v383_v43 = vpack.c.bf16 %v84_v42, %v83_v41  ;;  %v67_v44 = vld [vmem:[#allocation2 + $0x130] sm:$0xff]  ;;  %v68_v45 = vld [vmem:[#allocation2 + $0x138] sm:$0xff]  ;;  %v85_v52 = vld [vmem:[#allocation2 + $0x1c0] sm:$0xff]  ;;  %v355_v55 = vpack.c.bf16 %v54_v50, %v53_v46 }
  0x1e   :  { %350 = vmatpush3.bf16.msra.mxu0 %v349_v33  ;;  %v86_v53 = vld [vmem:[#allocation2 + $0x1c8] sm:$0xff]  ;;  %v385_v54 = vpack.c.bf16 %v68_v45, %v67_v44  ;;  %v37_v56 = vld [vmem:[#allocation2 + $0x40] sm:$0xff]  ;;  %v55_v61 = vld [vmem:[#allocation2 + $0xd0] sm:$0xff] }
  0x1f   :  { %352 = vmatprep.subr.bf16.mxu0 %v351_v39  ;;  %v38_v57 = vld [vmem:[#allocation2 + $0x48] sm:$0xff]  ;;  %v69_v58 = vld [vmem:[#allocation2 + $0x140] sm:$0xff]  ;;  %v387_v59 = vpack.c.bf16 %v86_v53, %v85_v52  ;;  %v56_v62 = vld [vmem:[#allocation2 + $0xd8] sm:$0xff] }
  0x20   :  { %382 = vmatpush3.bf16.msra.mxu1 %v381_v38  ;;  %v70_v60 = vld [vmem:[#allocation2 + $0x148] sm:$0xff]  ;;  %v87_v1 = vld [vmem:[#allocation2 + $0x1d0] sm:$0xff]  ;;  %v88_v2 = vld [vmem:[#allocation2 + $0x1d8] sm:$0xff]  ;;  %v357_v3 = vpack.c.bf16 %v38_v57, %v37_v56  ;;  %v359_v5 = vpack.c.bf16 %v56_v62, %v55_v61 }
  0x21   :  { %384 = vmatprep.subr.bf16.mxu1 %v383_v43  ;;  %v389_v4 = vpack.c.bf16 %v70_v60, %v69_v58  ;;  %v39_v6 = vld [vmem:[#allocation2 + $0x50] sm:$0xff]  ;;  %v40_v7 = vld [vmem:[#allocation2 + $0x58] sm:$0xff]  ;;  %v391_v9 = vpack.c.bf16 %v88_v2, %v87_v1  ;;  %v57_v11 = vld [vmem:[#allocation2 + $0xe0] sm:$0xff] }
  0x22   :  { %354 = vmatpush3.bf16.msra.mxu0 %v353_v51  ;;  %v71_v8 = vld [vmem:[#allocation2 + $0x150] sm:$0xff]  ;;  %v72_v10 = vld [vmem:[#allocation2 + $0x158] sm:$0xff]  ;;  %v58_v12 = vld [vmem:[#allocation2 + $0xe8] sm:$0xff]  ;;  %v361_v16 = vpack.c.bf16 %v40_v7, %v39_v6 }
  0x23   :  { %356 = vmatprep.subr.bf16.mxu0 %v355_v55  ;;  %v89_v14 = vld [vmem:[#allocation2 + $0x1e0] sm:$0xff]  ;;  %v90_v15 = vld [vmem:[#allocation2 + $0x1e8] sm:$0xff]  ;;  %v393_v18 = vpack.c.bf16 %v72_v10, %v71_v8  ;;  %v363_v19 = vpack.c.bf16 %v58_v12, %v57_v11  ;;  %v59_v25 = vld [vmem:[#allocation2 + $0xf0] sm:$0xff] }
  0x24   :  { %386 = vmatpush3.bf16.msra.mxu1 %v385_v54  ;;  %v41_v17 = vld [vmem:[#allocation2 + $0x60] sm:$0xff]  ;;  %v42_v20 = vld [vmem:[#allocation2 + $0x68] sm:$0xff]  ;;  %v395_v23 = vpack.c.bf16 %v90_v15, %v89_v14  ;;  %v60_v26 = vld [vmem:[#allocation2 + $0xf8] sm:$0xff] }
  0x25   :  { %388 = vmatprep.subr.bf16.mxu1 %v387_v59  ;;  %v73_v21 = vld [vmem:[#allocation2 + $0x160] sm:$0xff]  ;;  %v74_v24 = vld [vmem:[#allocation2 + $0x168] sm:$0xff]  ;;  %v91_v29 = vld [vmem:[#allocation2 + $0x1f0] sm:$0xff]  ;;  %v365_v31 = vpack.c.bf16 %v42_v20, %v41_v17  ;;  %v367_v35 = vpack.c.bf16 %v60_v26, %v59_v25 }
  0x26   :  { %358 = vmatpush3.bf16.msra.mxu0 %v357_v3  ;;  %v28_v22 = vld [vmem:[%s477_s0] sm:$0xff]  ;;  %v92_v30 = vld [vmem:[#allocation2 + $0x1f8] sm:$0xff]  ;;  %v397_v34 = vpack.c.bf16 %v74_v24, %v73_v21  ;;  %v43_v36 = vld [vmem:[#allocation2 + $0x70] sm:$0xff] }
  0x27   :  { %360 = vmatprep.subr.bf16.mxu0 %v359_v5  ;;  %v108_v27 = vrot.slane %v28_v22, %v107_v13  ;;  %v101_v28 = vcombine.high %v28_v22, %v28_v22  ;;  %v44_v37 = vld [vmem:[#allocation2 + $0x78] sm:$0xff]  ;;  %v399_v38 = vpack.c.bf16 %v92_v30, %v91_v29  ;;  %v75_v39 = vld [vmem:[#allocation2 + $0x170] sm:$0xff]  ;;  %v268_v45 = vld [vmem:[%s479_s2] ss:$0 sm:$0xff] }
  0x28   :  { %390 = vmatpush3.bf16.msra.mxu1 %v389_v4  ;;  %v76_v40 = vld [vmem:[#allocation2 + $0x178] sm:$0xff]  ;;  %v369_v42 = vpack.c.bf16 %v44_v37, %v43_v36 }
  0x29   :  { %392 = vmatprep.subr.bf16.mxu1 %v391_v9  ;;  %v116_v32 = vcombine.high %v108_v27, %v108_v27  ;;  %v115_v33 = vrot.slane %v101_v28, %v107_v13  ;;  %v401_v43 = vpack.c.bf16 %v76_v40, %v75_v39 }
  0x2a   :  { %362 = vmatpush3.bf16.msra.mxu0 %v361_v16 }
  0x2b   :  { %364 = vmatprep.subr.bf16.mxu0 %v363_v19  ;;  %186 = vmatprep.mubr.f32.mxu0 %v116_v32  ;;  %v117_v41 = vcombine.high %v115_v33, %v115_v33 }
  0x2c   :  { %394 = vmatpush3.bf16.msra.mxu1 %v393_v18 }
  0x2d   :  { %396 = vmatprep.subr.bf16.mxu1 %v395_v23  ;;  %256 = vmatprep.mubr.f32.mxu1 %v117_v41 }
  0x2e   :  { %366 = vmatpush3.bf16.msra.mxu0 %v365_v31 }
  0x2f   :  { %368 = vmatprep.subr.bf16.mxu0 %v367_v35 }
  0x30   :  { %398 = vmatpush3.bf16.msra.mxu1 %v397_v34 }
  0x31   :  { %400 = vmatprep.subr.bf16.mxu1 %v399_v38 }
  0x32   :  { %370 = vmatpush3.bf16.msra.mxu0 %v369_v42 }
  0x34   :  { %402 = vmatpush3.bf16.msra.mxu1 %v401_v43 }
  0x35   :  { %187 = vmatmul.mubr.f32.vlgmr.msra.gmra.mrb[0].mxu0 %v108_v27 }
  0x37   :  { %257 = vmatmul.mubr.f32.vlgmr.msra.gmra.mrb[0].mxu1 %v115_v33 }
 0x108   :  { %v301_v44 = vpop.f32.mrb[0].mxu0 }
 0x109   :  { %v302_v46 = vpop.f32.mrb[1].mxu0 }
 0x10a   :  { %v336_v47 = vpop.f32.mrb[0].mxu1  ;;  %v303_v48 = vadd.f32 %v302_v46, %v301_v44 }
 0x10b   :  { %v337_v49 = vpop.f32.mrb[1].mxu1 }
 0x10c   :  { %v338_v50 = vadd.f32 %v337_v49, %v336_v47  ;;  %v189_v51 = vadd.f32 %v303_v48, %v268_v45 }
 0x10e   :  { %v259_v52 = vadd.f32 %v338_v50, %v189_v51 }
 0x110   :  { %262 = vst [vmem:[%s480_s3] sm:$0x3] %v259_v52 }
 0x111   :  { %267 = vsyncpa [#allocation3], 1 }

</bundles_post_ra>
